<compile_context>
chip_gen: v7x
topology: tpu7x:2x2x1
jax: 0.10.0
libtpu: 0.0.40
codegen_flags: <defaults>
</compile_context>

<pallas_src>
import math
from typing import Any, NamedTuple

import numpy as np
import jax
import jax.numpy as jnp
from jax.experimental import pallas as pl
from jax.experimental.pallas import tpu as pltpu


# --------------------------------------------------------------------------------------------
# Tiling helpers
# --------------------------------------------------------------------------------------------

def _round_up(v: int, m: int) -> int:
    return -(-v // m) * m


def _vmem_capacity_bytes() -> int:
    """Physical VMEM of the local TPU; conservative 64 MiB (v7x-like) if the query fails."""
    try:
        info = pltpu.get_tpu_info()
        cap = getattr(info, "vmem_capacity_bytes", None)
        if cap:
            return int(cap)
    except Exception:
        pass
    return 64 * 1024 * 1024


class _TileCaps(NamedTuple):
    tm_cap: int
    tn_cap: int
    tk_cap: int
    vmem_budget: int
    vmem_limit_bytes: int


def _device_tiling_caps() -> _TileCaps:
    cap = _vmem_capacity_bytes()
    if cap >= 100 * 1024 * 1024:
        # v5e / v6e: 128 MiB physical VMEM -> go big (intensity ~512 FLOP/byte at 1024x1024).
        budget = 96 * 1024 * 1024
        tm_cap = tn_cap = 1024
    else:
        # v7x (64 MiB per TC) or unknown: keep the working set <= ~48 MiB.
        budget = 48 * 1024 * 1024
        tm_cap = tn_cap = 768
    return _TileCaps(tm_cap, tn_cap, 1024, budget, budget)


def _pick_tile(dim: int, cap: int, align: int) -> int:
    """Largest tile (multiple of `align`, <= cap) with padding waste <= ~6% of the dim.

    If the (aligned) dim fits under the cap, use it whole (single tile, zero waste).
    Prefers padding the dim up to a big tile over degrading to many tiny tiles.
    """
    dim_a = _round_up(dim, align)
    if dim_a <= cap:
        return dim_a
    max_waste = max(align, dim_a // 16)
    t = (cap // align) * align
    while t > align:
        if _round_up(dim_a, t) - dim_a <= max_waste:
            return t
        t -= align
    return align


# --------------------------------------------------------------------------------------------
# Kernels
# --------------------------------------------------------------------------------------------

def _rowlin_kernel_accum_in_out(x_ref, w_ref, b_ref, o_ref):
    """f32 output path: the output tile itself is the accumulator (resident across the K axis)."""
    @pl.when(pl.program_id(2) == 0)
    def _():
        o_ref[...] = jnp.broadcast_to(b_ref[...], o_ref.shape)

    o_ref[...] += jnp.dot(x_ref[...], w_ref[...], preferred_element_type=jnp.float32)


def _rowlin_kernel_scratch_acc(x_ref, w_ref, b_ref, o_ref, acc_ref):
    """Non-f32 output path: f32 scratch accumulator, cast once at the last K step."""
    k = pl.program_id(2)

    @pl.when(k == 0)
    def _():
        acc_ref[...] = jnp.broadcast_to(b_ref[...], acc_ref.shape)

    acc_ref[...] += jnp.dot(x_ref[...], w_ref[...], preferred_element_type=jnp.float32)

    @pl.when(k == pl.num_programs(2) - 1)
    def _():
        o_ref[...] = acc_ref[...].astype(o_ref.dtype)


# --------------------------------------------------------------------------------------------
# Parameter preparation (done once, outside the per-call path)
# --------------------------------------------------------------------------------------------

class RowParallelParams(NamedTuple):
    w_kn: jax.Array        # (K_pad, N_pad) compute_dtype, pre-transposed / padded weight
    b_row: jax.Array       # (1, N_pad) float32 bias (zeros if the module had bias=None)
    in_features: int
    out_features: int
    K_pad: int
    N_pad: int
    tn: int
    tk: int
    tm_cap: int
    vmem_budget: int
    vmem_limit_bytes: int
    compute_dtype: Any


def prepare_row_parallel_params(weight, bias, world_size, *, compute_dtype=jnp.bfloat16):
    """One-time static prep of the (full, rank-concatenated) RowParallelLinear parameters.

    weight: [out_features, in_features] (nn.Linear layout; per-rank shards are contiguous rows)
    bias:   [out_features] or None
    """
    N, K = weight.shape
    assert N % world_size == 0, "out_features must be divisible by world_size"

    caps = _device_tiling_caps()
    tn = _pick_tile(N, caps.tn_cap, 128)
    tk = _pick_tile(K, caps.tk_cap, 128)
    N_pad = _round_up(N, tn)
    K_pad = _round_up(K, tk)

    # Hoisted static weight work: transpose to (K, N), cast, zero-pad to tile multiples.
    w_kn = jnp.asarray(weight).T.astype(compute_dtype)
    if (K_pad, N_pad) != (K, N):
        w_kn = jnp.pad(w_kn, ((0, K_pad - K), (0, N_pad - N)))

    if bias is None:
        b_row = jnp.zeros((1, N_pad), jnp.float32)
    else:
        b_row = jnp.asarray(bias, jnp.float32).reshape(1, N)
        if N_pad != N:
            b_row = jnp.pad(b_row, ((0, 0), (0, N_pad - N)))

    return RowParallelParams(
        w_kn=w_kn, b_row=b_row, in_features=K, out_features=N,
        K_pad=K_pad, N_pad=N_pad, tn=tn, tk=tk, tm_cap=caps.tm_cap,
        vmem_budget=caps.vmem_budget, vmem_limit_bytes=caps.vmem_limit_bytes,
        compute_dtype=compute_dtype,
    )


# --------------------------------------------------------------------------------------------
# Forward
# --------------------------------------------------------------------------------------------

def row_parallel_linear_apply(x, params: RowParallelParams, *, out_dtype=None):
    """y = x @ W^T + b  (== all_gather+cat of the per-rank RowParallelLinear outputs).

    x: [..., in_features]  ->  [..., out_features]
    """
    lead = x.shape[:-1]
    K = x.shape[-1]
    assert K == params.in_features, "in_features mismatch"
    N, N_pad, K_pad, tk = params.out_features, params.N_pad, params.K_pad, params.tk
    out_dtype = np.dtype(x.dtype if out_dtype is None else out_dtype)
    in_item = np.dtype(params.compute_dtype).itemsize
    acc_in_out = out_dtype == np.dtype(jnp.float32)

    M = math.prod(lead) if lead else 1
    tm = _pick_tile(M, params.tm_cap, 8)
    tn = params.tn

    # Defensive VMEM-budget guard (double-buffered inputs + out tile + optional f32 scratch).
    def _working_set(tm_, tn_):
        inp = 2 * (tm_ * tk + tk * tn_) * in_item
        outb = 2 * tm_ * tn_ * out_dtype.itemsize
        accb = 0 if acc_in_out else tm_ * tn_ * 4
        return inp + outb + accb + 2 * tn_ * 4

    while _working_set(tm, tn) > params.vmem_budget and tm > 8:
        tm = max(8, _round_up(tm // 2, 8))

    M_pad = _round_up(M, tm)

    # Keep >=2 spatial grid tiles so both v7x TensorCores get work (harmless elsewhere).
    if (M_pad // tm) * (N_pad // tn) < 2:
        if tn >= 256 and tn % 256 == 0:
            tn //= 2
        elif tm >= 16 and tm % 16 == 0:
            tm //= 2
            M_pad = _round_up(M, tm)

    # Per-call activation prep only (weight/bias were prepped once in prepare_*).
    x2d = x.reshape(M, K).astype(params.compute_dtype)
    if (M_pad, K_pad) != (M, K):
        x2d = jnp.pad(x2d, ((0, M_pad - M), (0, K_pad - K)))

    grid = (M_pad // tm, N_pad // tn, K_pad // tk)
    kernel = _rowlin_kernel_accum_in_out if acc_in_out else _rowlin_kernel_scratch_acc
    scratch = [] if acc_in_out else [pltpu.VMEM((tm, tn), jnp.float32)]

    out = pl.pallas_call(
        kernel,
        out_shape=jax.ShapeDtypeStruct((M_pad, N_pad), out_dtype),
        grid_spec=pltpu.PrefetchScalarGridSpec(
            num_scalar_prefetch=0,
            grid=grid,
            in_specs=[
                pl.BlockSpec((tm, tk), lambda i, j, k: (i, k)),   # activations tile (M, K)
                pl.BlockSpec((tk, tn), lambda i, j, k: (k, j)),   # weight tile, (K, N) layout
                pl.BlockSpec((1, tn), lambda i, j, k: (0, j)),    # bias tile (added at k == 0)
            ],
            out_specs=pl.BlockSpec((tm, tn), lambda i, j, k: (i, j)),
            scratch_shapes=scratch,
        ),
        compiler_params=pltpu.CompilerParams(
            dimension_semantics=("parallel", "parallel", "arbitrary"),
            vmem_limit_bytes=params.vmem_limit_bytes,
        ),
        cost_estimate=pl.CostEstimate(
            flops=2 * M_pad * N_pad * K_pad,
            transcendentals=0,
            # Account for spatial re-reads: x streamed once per N-tile, W once per M-tile.
            bytes_accessed=(M_pad * K_pad * in_item) * (N_pad // tn)
            + (K_pad * N_pad * in_item) * (M_pad // tm)
            + M_pad * N_pad * out_dtype.itemsize,
        ),
    )(x2d, params.w_kn, params.b_row)

    return out[:M, :N].reshape(lead + (N,))


def row_parallel_linear(x, weight, bias, world_size, *,
                        compute_dtype=jnp.bfloat16, out_dtype=None):
    """Convenience one-shot wrapper.  Prefer prepare_row_parallel_params() + *_apply() so the
    static weight cast/transpose/pad is hoisted out of the per-call path."""
    params = prepare_row_parallel_params(weight, bias, world_size, compute_dtype=compute_dtype)
    return row_parallel_linear_apply(x, params, out_dtype=out_dtype)


# TODO(synk): torch.distributed all_gather/cat is an identity on one device (rank-ordered shard
# concat == full linear), so no collective is emitted; a true multi-chip version would shard N
# and use pltpu.make_async_remote_copy to gather shards.


if __name__ == "__main__":
    # Small GPT-ish shapes consistent with the module.
    batch, seq = 2, 8
    in_features = 128
    out_features = 512
    world_size = 4  # out_features % world_size == 0 -> local_out = 128

    key = jax.random.PRNGKey(0)
    kx, kw, kb = jax.random.split(key, 3)
    x = jax.random.normal(kx, (batch, seq, in_features), dtype=jnp.float32)
    weight = jax.random.normal(kw, (out_features, in_features), dtype=jnp.float32) * 0.02
    bias = jax.random.normal(kb, (out_features,), dtype=jnp.float32) * 0.02

    # Weight prep hoisted out of the step (parameters are static).
    params = prepare_row_parallel_params(weight, bias, world_size)
    apply_fn = jax.jit(lambda xx: row_parallel_linear_apply(xx, params))

    y = jax.block_until_ready(apply_fn(x))
    assert y.shape == (batch, seq, out_features)

    # Reference: F.linear followed by all_gather+cat == full linear.  Match the kernel's bf16
    # input rounding (f32 accumulation) so the comparison is tight.
    x_bf = x.astype(jnp.bfloat16).astype(jnp.float32)
    w_bf = weight.astype(jnp.bfloat16).astype(jnp.float32)
    y_ref = jnp.einsum("bsk,nk->bsn", x_bf, w_bf) + bias
    assert jnp.allclose(y, y_ref, atol=2e-3, rtol=2e-3), "mismatch vs reference"

    # Loose sanity check against the full-precision reference as well.
    y_ref_f32 = jnp.einsum("bsk,nk->bsn", x, weight) + bias
    assert jnp.allclose(y, y_ref_f32, atol=3e-2, rtol=3e-2), "mismatch vs f32 reference"

    print("KERNEL_OK")
</pallas_src>

<mosaic_0001>
module attributes {stable_mosaic.version = 11 : i64} {
  func.func @_rowlin_kernel_accum_in_out(%arg0: i32, %arg1: i32, %arg2: i32, %arg3: memref<16x128xbf16, #tpu.memory_space<vmem>>, %arg4: memref<128x256xbf16, #tpu.memory_space<vmem>>, %arg5: memref<1x256xf32, #tpu.memory_space<vmem>>, %arg6: memref<16x256xf32, #tpu.memory_space<vmem>>) attributes {dimension_semantics = [#tpu.dimension_semantics<parallel>, #tpu.dimension_semantics<parallel>, #tpu.dimension_semantics<arbitrary>], iteration_bounds = array<i64: 1, 2, 1>, scalar_prefetch = 0 : i64, scratch_operands = 0 : i64, tpu.core_type = #tpu.core_type<tc>, window_params = [{transform_indices = @transform_0, window_bounds = array<i64: 16, 128>}, {transform_indices = @transform_1, window_bounds = array<i64: 128, 256>}, {transform_indices = @transform_2, window_bounds = array<i64: 1, 256>}, {transform_indices = @transform_3, window_bounds = array<i64: 16, 256>}]} {
    %c0_i32 = arith.constant 0 : i32
    %0 = arith.cmpi eq, %arg2, %c0_i32 : i32
    %1 = arith.extui %0 : i1 to i32
    %c0_i32_0 = arith.constant 0 : i32
    %2 = arith.cmpi ne, %1, %c0_i32_0 : i32
    scf.if %2 {
      %c0_8 = arith.constant 0 : index
      %c0_9 = arith.constant 0 : index
      %9 = vector.load %arg5[%c0_8, %c0_9] : memref<1x256xf32, #tpu.memory_space<vmem>>, vector<1x256xf32>
      %10 = vector.shape_cast %9 : vector<1x256xf32> to vector<1x256xf32>
      %11 = vector.broadcast %10 : vector<1x256xf32> to vector<16x256xf32>
      %c0_10 = arith.constant 0 : index
      %c0_11 = arith.constant 0 : index
      %12 = vector.load %arg6[%c0_10, %c0_11] : memref<16x256xf32, #tpu.memory_space<vmem>>, vector<16x256xf32>
      tpu.vector_store %arg6[%c0_10, %c0_11], %11 {strides = array<i32>} : memref<16x256xf32, #tpu.memory_space<vmem>>, vector<16x256xf32>,
    } else {
    }
    %c0 = arith.constant 0 : index
    %c0_1 = arith.constant 0 : index
    %3 = vector.load %arg6[%c0, %c0_1] : memref<16x256xf32, #tpu.memory_space<vmem>>, vector<16x256xf32>
    %c0_2 = arith.constant 0 : index
    %c0_3 = arith.constant 0 : index
    %4 = vector.load %arg3[%c0_2, %c0_3] : memref<16x128xbf16, #tpu.memory_space<vmem>>, vector<16x128xbf16>
    %c0_4 = arith.constant 0 : index
    %c0_5 = arith.constant 0 : index
    %5 = vector.load %arg4[%c0_4, %c0_5] : memref<128x256xbf16, #tpu.memory_space<vmem>>, vector<128x256xbf16>
    %cst = arith.constant dense<0.000000e+00> : vector<16x256xf32>
    %6 = tpu.matmul %4, %5, %cst {dimension_numbers = #tpu.dot_dimension_numbers<[1], [0], [0], [1], [0, 0, 1, 1], [], []>} : vector<16x128xbf16>, vector<128x256xbf16>, vector<16x256xf32> -> vector<16x256xf32>
    %7 = arith.addf %3, %6 : vector<16x256xf32>
    %c0_6 = arith.constant 0 : index
    %c0_7 = arith.constant 0 : index
    %8 = vector.load %arg6[%c0_6, %c0_7] : memref<16x256xf32, #tpu.memory_space<vmem>>, vector<16x256xf32>
    tpu.vector_store %arg6[%c0_6, %c0_7], %7 {strides = array<i32>} : memref<16x256xf32, #tpu.memory_space<vmem>>, vector<16x256xf32>,
    return
  }
  func.func @transform_0(%arg0: i32, %arg1: i32, %arg2: i32) -> (i32, i32) {
    %c0_i32 = arith.constant 0 : i32
    return %arg0, %arg2 : i32, i32
  }
  func.func @transform_1(%arg0: i32, %arg1: i32, %arg2: i32) -> (i32, i32) {
    %c0_i32 = arith.constant 0 : i32
    return %arg2, %arg1 : i32, i32
  }
  func.func @transform_2(%arg0: i32, %arg1: i32, %arg2: i32) -> (i32, i32) {
    %c0_i32 = arith.constant 0 : i32
    %c0_i32_0 = arith.constant 0 : i32
    return %c0_i32, %arg1 : i32, i32
  }
  func.func @transform_3(%arg0: i32, %arg1: i32, %arg2: i32) -> (i32, i32) {
    %c0_i32 = arith.constant 0 : i32
    return %arg0, %arg1 : i32, i32
  }
}

</mosaic_0001>

<bundles_post_ra>
// kernel: _lambda_.1
= control target key start
LH: loop header
LB: loop body
LE: loop exit
PB: predicated region body
PF: predicated region fallthrough
CT: control target
= control target key end

     0   :  { %8 = vsyncpa [#allocation4], 0  ;;  %s1029_s0 = inlined_call_operand.vmem [shape: bf16[16,128], index: 0, kind: input, shape index: {}]   ;;  %s1030_s1 = inlined_call_operand.vmem [shape: bf16[128,512], index: 1, kind: input, shape index: {}]   ;;  %s1031_s2 = inlined_call_operand.vmem [shape: f32[1,512], index: 2, kind: input, shape index: {}]   ;;  %s1032_s3 = inlined_call_operand.hbm [shape: f32[16,512], index: 3, kind: output, shape index: {}]  }
   0x1   :  { %10 = vsyncpa [#allocation4 + $0x1], 0  ;;  %s880_s12 = smov 0   ;;  %s882_s13 = smov 0  }
   0x2   :  { %s884_s14 = smov 0   ;;  %s886_s15 = smov 0  }
   0x3   :  { %s888_s16 = smov 0   ;;  %s890_s17 = smov 0  }
   0x4 LB: > { %s655_s18 = sadd.s32 4294967295, %s853_s17   ;;  %s656_s19 = sadd.s32 4294967294, %s853_s17   ;;  %s853_s17 = sphi %s890_s17, %s16_s17   ;;  %s849_s16 = sphi %s888_s16, %s1039_s16   ;;  %s845_s15 = sphi %s886_s15, %s1038_s15   ;;  %s841_s14 = sphi %s884_s14, %s1037_s14   ;;  %s837_s13 = sphi %s882_s13, %s1036_s13   ;;  %s833_s12 = sphi %s880_s12, %s1035_s12  }
   0x5   : > { %s31_s20 = sadd.s32 1, %s849_s16  ;;  %s72_s21 = sadd.s32 1, %s841_s14 }
   0x6   : > { %p33_p0 = scmp.ge.s32.totalorder %s31_s20, 2  ;;  %p79_p1 = scmp.ne.s32.totalorder %s841_s14, %s837_s13 }
   0x7   : > { %p80_p2 = scmp.eq.s32.totalorder %s853_s17, 0  ;;  %p137_p3 = scmp.eq.s32.totalorder %s655_s18, 1 }
   0x8   : > { %s1041_s20 = smov (%p33_p0, %s31_s20), 0  ;;  %p142_p6 = scmp.ne.s32.totalorder %s837_s13, %s833_s12 }
   0x9   : > { %p81_p4 = por %p80_p2, %p79_p1  ;;  %p919_p5 = por %p137_p3, %p79_p1 }
   0xa   : > { %s68_s23 = ssub.s32 %s849_s16, %s1041_s20  ;;  %p143_p8 = scmp.eq.s32.totalorder %s656_s19, 1 }
   0xb   : > { %p70_p7 = scmp.eq.s32.totalorder %s68_s23, 0  ;;  %p659_p10 = scmp.ge.s32.totalorder %s853_s17, 2 }
   0xc   : > { %p930_p9 = por %p143_p8, %p142_p6 }
   0xd   : > { %s928_s24 = scalar_select %p70_p7, %s841_s14, %s72_s21  }
   0xe   : > { %171 = sbr.rel (%p659_p10) target bundleno = 33 (0x21), region = 20 }
  0x15   : > { %174 = sbr.rel (!%p81_p4) target bundleno = 33 (0x21), region = 24  ;;  %s176_s26 = sand.u32 (%p81_p4), 1, %s841_s14  }
  0x16   : > { %s689_s27 = sshll.u32 (%p81_p4), %s849_s16, 3  ;;  %s660_s28 = sshll.u32 (%p81_p4), %s176_s26, 7 }
  0x17   : > { %s942_s4 = scalar_lea.vmem (%p81_p4), %s1030_s1, %s689_s27  ;;  %s178_s5 = scalar_lea.vmem (%p81_p4), [#allocation2], %s660_s28 }
  0x18   : > { %v242_v0 = vld [vmem:[%s942_s4] sm:$0xff] (%p81_p4)  ;;  %v244_v1 = vld [vmem:[%s942_s4 + $0x10] sm:$0xff] (%p81_p4) }
  0x19   : > { %v246_v2 = vld [vmem:[%s942_s4 + $0x20] sm:$0xff] (%p81_p4)  ;;  %243 = vst [vmem:[%s178_s5] sm:$0xff] (%p81_p4), %v242_v0  ;;  %245 = vst [vmem:[%s178_s5 + $0x8] sm:$0xff] (%p81_p4), %v244_v1  ;;  %v248_v3 = vld [vmem:[%s942_s4 + $0x30] sm:$0xff] (%p81_p4) }
  0x1a   : > { %247 = vst [vmem:[%s178_s5 + $0x10] sm:$0xff] (%p81_p4), %v246_v2  ;;  %v250_v4 = vld [vmem:[%s942_s4 + $0x40] sm:$0xff] (%p81_p4)  ;;  %v252_v5 = vld [vmem:[%s942_s4 + $0x50] sm:$0xff] (%p81_p4)  ;;  %249 = vst [vmem:[%s178_s5 + $0x18] sm:$0xff] (%p81_p4), %v248_v3 }
  0x1b   : > { %251 = vst [vmem:[%s178_s5 + $0x20] sm:$0xff] (%p81_p4), %v250_v4  ;;  %253 = vst [vmem:[%s178_s5 + $0x28] sm:$0xff] (%p81_p4), %v252_v5  ;;  %v254_v6 = vld [vmem:[%s942_s4 + $0x60] sm:$0xff] (%p81_p4)  ;;  %v256_v7 = vld [vmem:[%s942_s4 + $0x70] sm:$0xff] (%p81_p4) }
  0x1c   : > { %v258_v8 = vld [vmem:[%s942_s4 + $0x80] sm:$0xff]  ;;  %255 = vst [vmem:[%s178_s5 + $0x30] sm:$0xff] %v254_v6  ;;  %257 = vst [vmem:[%s178_s5 + $0x38] sm:$0xff] %v256_v7  ;;  %v260_v9 = vld [vmem:[%s942_s4 + $0x90] sm:$0xff] }
  0x1d   : > { %259 = vst [vmem:[%s178_s5 + $0x40] sm:$0xff] %v258_v8  ;;  %v262_v10 = vld [vmem:[%s942_s4 + $0xa0] sm:$0xff]  ;;  %v264_v11 = vld [vmem:[%s942_s4 + $0xb0] sm:$0xff]  ;;  %261 = vst [vmem:[%s178_s5 + $0x48] sm:$0xff] %v260_v9 }
  0x1e   : > { %263 = vst [vmem:[%s178_s5 + $0x50] sm:$0xff] %v262_v10  ;;  %265 = vst [vmem:[%s178_s5 + $0x58] sm:$0xff] %v264_v11  ;;  %v266_v12 = vld [vmem:[%s942_s4 + $0xc0] sm:$0xff]  ;;  %v268_v13 = vld [vmem:[%s942_s4 + $0xd0] sm:$0xff] }
  0x1f   : > { %v270_v14 = vld [vmem:[%s942_s4 + $0xe0] sm:$0xff]  ;;  %267 = vst [vmem:[%s178_s5 + $0x60] sm:$0xff] %v266_v12  ;;  %269 = vst [vmem:[%s178_s5 + $0x68] sm:$0xff] %v268_v13  ;;  %v272_v15 = vld [vmem:[%s942_s4 + $0xf0] sm:$0xff] }
  0x20   : > { %271 = vst [vmem:[%s178_s5 + $0x70] sm:$0xff] %v270_v14  ;;  %273 = vst [vmem:[%s178_s5 + $0x78] sm:$0xff] %v272_v15 }
  0x21 PF: > { %p663_p11 = scmp.ge.s32.totalorder %s853_s17, 1  ;;  %p286_p12 = scmp.lt.s32.totalorder %s853_s17, 3 }
  0x23   : > { %p287_p13 = pnand %p663_p11, %p286_p12 }
  0x24   : > { %s963_s6 = sand.u32 (!%p287_p13), 1, %s837_s13   ;;  %v855_v16 = vmov (!%p287_p13), 0   ;;  %v774_v33 = vld [vmem:[%s1029_s0] sm:$0xff] (!%p287_p13)   ;;  %s666_s11 = sshll.u32 (!%p287_p13), %s845_s15, 1  ;;  %v353_v34 = vlaneseq (!%p287_p13) }
  0x25   : > { %290 = sbr.rel (%p287_p13) target bundleno = 305 (0x131), region = 66  ;;  %s664_s7 = sshll.u32 (!%p287_p13), %s963_s6, 7  ;;  %507 = vmatprep.mubr.bf16.mxu0 (!%p287_p13), %v855_v16 }
  0x26   : > { %s295_s8 = scalar_lea.vmem (!%p287_p13), [#allocation2], %s664_s7  ;;  %p340_p0 = scmp.lt.s32.totalorder (!%p287_p13), %s666_s11, 3  ;;  %v354_v35 = vshrl.u32 (!%p287_p13), %v353_v34, 7 }
  0x27   : > { %v750_v17 = vld [vmem:[%s295_s8 + $0x4] ss:$8 sps:$4 sm:$0xff] (!%p287_p13)   ;;  %v752_v18 = vld [vmem:[%s295_s8] ss:$8 sps:$4 sm:$0xff] (!%p287_p13)   ;;  %v753_v19 = vld [vmem:[%s295_s8 + $0x14] ss:$8 sps:$4 sm:$0xff] (!%p287_p13)  }
  0x28   : > { %475 = vmatprep.subr.bf16.mxu0 (!%p287_p13), %v750_v17  ;;  %v755_v20 = vld [vmem:[%s295_s8 + $0x10] ss:$8 sps:$4 sm:$0xff] (!%p287_p13)   ;;  %v756_v21 = vld [vmem:[%s295_s8 + $0x24] ss:$8 sps:$4 sm:$0xff] (!%p287_p13)   ;;  %v758_v22 = vld [vmem:[%s295_s8 + $0x20] ss:$8 sps:$4 sm:$0xff] (!%p287_p13)  }
  0x29   : > { %476 = vmatpush1.bf16.msra.mxu0 (!%p287_p13), %v752_v18  ;;  %v759_v23 = vld [vmem:[%s295_s8 + $0x34] ss:$8 sps:$4 sm:$0xff] (!%p287_p13)   ;;  %v761_v24 = vld [vmem:[%s295_s8 + $0x30] ss:$8 sps:$4 sm:$0xff] (!%p287_p13)   ;;  %v762_v25 = vld [vmem:[%s295_s8 + $0x44] ss:$8 sps:$4 sm:$0xff] (!%p287_p13)  }
  0x2a   : > { %477 = vmatprep.subr.bf16.mxu0 (!%p287_p13), %v753_v19  ;;  %v764_v26 = vld [vmem:[%s295_s8 + $0x40] ss:$8 sps:$4 sm:$0xff] (!%p287_p13)   ;;  %v765_v27 = vld [vmem:[%s295_s8 + $0x54] ss:$8 sps:$4 sm:$0xff] (!%p287_p13)   ;;  %v767_v28 = vld [vmem:[%s295_s8 + $0x50] ss:$8 sps:$4 sm:$0xff] (!%p287_p13)  }
  0x2b   : > { %v768_v29 = vld [vmem:[%s295_s8 + $0x64] ss:$8 sps:$4 sm:$0xff] (!%p287_p13)   ;;  %v770_v30 = vld [vmem:[%s295_s8 + $0x60] ss:$8 sps:$4 sm:$0xff] (!%p287_p13)   ;;  %v771_v31 = vld [vmem:[%s295_s8 + $0x74] ss:$8 sps:$4 sm:$0xff] (!%p287_p13)  }
  0x2c   : > { %v773_v32 = vld [vmem:[%s295_s8 + $0x70] ss:$8 sps:$4 sm:$0xff]   ;;  %s1043_s11 = smov (!%p340_p0, %s666_s11), 3  ;;  %v355_v36 = vsub.s32 0, %v354_v35  ;;  %v359_v38 = vsub.s32 1, %v354_v35  ;;  %s665_s23 = sshll.u32 %s963_s6, 5 }
  0x2d   : > { %478 = vmatpush1.bf16.msra.mxu0 %v755_v20  ;;  %s342_s21 = scalar_lea.vmem %s1031_s2, %s1043_s11  ;;  %s690_s26 = sshll.u32 %s845_s15, 8 }
  0x2e   : > { %479 = vmatprep.subr.bf16.mxu0 %v756_v21  ;;  %v351_v37 = vld [vmem:[%s342_s21] sm:$0x3]  ;;  %s327_s27 = scalar_lea.vmem [#allocation3], %s665_s23  ;;  %s978_s4 = scalar_lea.hbm %s1032_s3, %s690_s26 }
  0x2f   : > { %v356_v39 = vrot.slane %v351_v37, %v355_v36  ;;  %v360_v40 = vrot.slane %v351_v37, %v359_v38  ;;  %s543_s28 = sshll.u32 %s327_s27, 4  ;;  %s527_s15 = scalar_lea.sflag [#allocation4], %s963_s6  ;;  %s980_s28 = int_to_ptr.vmem [resolvable:$true] %s543_s28 }
  0x30   : > { %s775_s5 = scalar_lea.vmem %s980_s28, 512  ;;  %s856_s7 = smov [#allocation3]  }
  0x31   : > { %480 = vmatpush1.bf16.msra.mxu0 %v758_v22  ;;  %p776_p1 = scmp.ne.s32.totalorder %s980_s28, %s775_s5  ;;  %s779_s8 = sshll.u32 %s856_s7, 4  ;;  %s780_s8 = int_to_ptr.vmem [resolvable:$false] %s779_s8 }
  0x32   : > { %481 = vmatprep.subr.bf16.mxu0 %v759_v23  ;;  %s781_s9 = scalar_lea.vmem %s780_s8, 1024  ;;  %p782_p4 = scmp.lt.s32.totalorder %s980_s28, %s780_s8 }
  0x33   : > { %p777_p2 = pnand %p776_p1, %p919_p5  ;;  %p783_p6 = scmp.lt.s32.totalorder %s781_s9, %s775_s5 }
  0x35   : > { %482 = vmatpush1.bf16.msra.mxu0 %v761_v24  ;;  %p778_p3 = pneg %p777_p2  ;;  %p784_p7 = por %p783_p6, %p782_p4 }
  0x36   : > { %483 = vmatprep.subr.bf16.mxu0 %v762_v25 }
  0x37   : > { %p785_p8 = pnand %p784_p7, %p778_p3 }
  0x39   : > { %484 = vmatpush1.bf16.msra.mxu0 %v764_v26 }
  0x3a   : > { %485 = vmatprep.subr.bf16.mxu0 %v765_v27 }
  0x3d   : > { %486 = vmatpush1.bf16.msra.mxu0 %v767_v28 }
  0x3e   : > { %487 = vmatprep.subr.bf16.mxu0 %v768_v29 }
  0x41   : > { %488 = vmatpush1.bf16.msra.mxu0 %v770_v30 }
  0x42   : > { %489 = vmatprep.subr.bf16.mxu0 %v771_v31 }
  0x45   : > { %490 = vmatpush1.bf16.msra.mxu0 %v773_v32 }
  0x48   : > { %508 = vmatmul.mubr.bf16.vlgmr.msra.gmra.mrb[0].mxu0 %v774_v33 }
 0x11b   : > { %v509_v41 = vpop.f32.mrb[0].mxu0 }
 0x11c   : > { %v518_v42 = vadd.f32 %v509_v41, %v356_v39  ;;  %v511_v43 = vpop.f32.mrb[1].mxu0 }
 0x11d   : > { %v519_v44 = vadd.f32 %v511_v43, %v360_v40  ;;  %v513_v45 = vpop.f32.mrb[2].mxu0 }
 0x11e   : > { %522 = vst [vmem:[%s327_s27] sm:$0xff] %v518_v42  ;;  %v520_v46 = vadd.f32 %v513_v45, %v356_v39  ;;  %v515_v47 = vpop.f32.mrb[3].mxu0 }
 0x11f   : > { %523 = vst [vmem:[%s327_s27 + $0x8] sm:$0xff] %v519_v44  ;;  %v521_v48 = vadd.f32 %v515_v47, %v360_v40 }
 0x120   : > { %524 = vst [vmem:[%s327_s27 + $0x10] sm:$0xff] %v520_v46 }
 0x121   : > { %525 = vst [vmem:[%s327_s27 + $0x18] sm:$0xff] %v521_v48 }
 0x122   : > { %788 = shalt.err (!%p785_p8)
}
 0x123   : > { %s789_s10 = scalar_lea.hbm %s978_s4, 512  ;;  %s793_s19 = scalar_lea.hbm %s1032_s3, 1024 }
 0x124   : > { %p790_p11 = scmp.ne.s32.totalorder %s978_s4, %s789_s10  ;;  %p794_p0 = scmp.lt.u32.totalorder %s978_s4, %s1032_s3 }
 0x125   : > { %p795_p1 = scmp.lt.u32.totalorder %s793_s19, %s789_s10  ;;  %p797_p3 = scmp.lt.u32.totalorder %s789_s10, %s978_s4 }
 0x126   : > { %p791_p12 = pnand %p790_p11, %p919_p5 }
 0x127   : > { %p796_p2 = por %p795_p1, %p794_p0 }
 0x128   : > { %p792_p13 = pneg %p791_p12 }
 0x129   : > { %p798_p4 = por %p797_p3, %p796_p2 }
 0x12b   : > { %p799_p6 = pnand %p798_p4, %p792_p13 }
 0x12d   : > { %802 = shalt.err (!%p799_p6)
}
 0x12e   : > { %s857_s26 = smov 256   ;;  %s858_s27 = smov 512  }
 0x12f   : > { %s859_s29 = smov 16  }
 0x130   : > { %691 = dma.vmem_to_hbm [thread:$0]  (%p919_p5), %s980_s28, 512, %s978_s4, %s527_s15, %s857_s26, %s858_s27, %s859_s29  }
 0x131 PF: > { %s558_s30 = sand.u32 1, %s833_s12   ;;  %p694_p7 = pnand %p659_p10, %p930_p9 }
 0x132   : > { %s559_s5 = scalar_lea.sflag [#allocation4], %s558_s30 }
 0x133   : > { %828 = dma.done.wait (!%p694_p7), %s559_s5, 512  }
 0x134   : > { %830 = vsyncadd (!%p694_p7), %s559_s5, 4294966784  ;;  %s16_s17 = sadd.s32 1, %s853_s17   ;;  %s1035_s12 = smov %s837_s13 }
 0x135   : > { %p13_p8 = scmp.ge.s32.totalorder %s16_s17, 4   ;;  %s1036_s13 = smov %s841_s14 }
 0x136   : > { %s1037_s14 = smov %s928_s24  ;;  %s1038_s15 = smov %s849_s16 }
 0x137   : > { %s1039_s16 = smov %s1041_s20  ;;  %15 = sbr.rel (!%p13_p8) target bundleno = 4 (0x4), region = 120 }
 0x13e   :  { %564 = vsyncpa [#allocation4], 1 }
 0x13f   :  { %566 = vsyncpa [#allocation4 + $0x1], 1 }

</bundles_post_ra>
